<compile_context>
chip_gen: v7x
topology: tpu7x:2x2x1
jax: 0.10.0
libtpu: 0.0.40
codegen_flags: <defaults>
</compile_context>

<pallas_src>
import functools

import jax
import jax.numpy as jnp
from jax.experimental import pallas as pl
from jax.experimental.pallas import tpu as pltpu


def _round_up(x, m):
    return ((x + m - 1) // m) * m


def mlp_dot_kernel(*refs, num_layers, mxu_dtype):
    xi_ref, xj_ref = refs[0], refs[1]
    wb_refs = refs[2:2 + 2 * num_layers]
    seg_ref = refs[2 + 2 * num_layers]           # (P*H, P) block-of-ones reducer
    out_ref = refs[3 + 2 * num_layers]           # (tm/P, P)

    hi = xi_ref[...]                             # (tm/P, P*C) f32
    hj = xj_ref[...]

    for l in range(num_layers):
        w = wb_refs[2 * l][...]                  # (P*Cin, P*H), pre-cast to mxu_dtype
        b = wb_refs[2 * l + 1][...]              # (1, P*H) f32
        hi = jnp.maximum(
            jnp.dot(hi.astype(mxu_dtype), w, preferred_element_type=jnp.float32) + b,
            0.0)
        hj = jnp.maximum(
            jnp.dot(hj.astype(mxu_dtype), w, preferred_element_type=jnp.float32) + b,
            0.0)
        # TODO(synk): training-mode stochastic dropout (pltpu.prng_*) not implemented;
        # eval-mode (identity) semantics only.

    # Segmented row-dot: each vreg row holds P logical rows; (hi * hj) @ seg sums each
    # H-wide lane segment exactly (f32), producing one dot product per logical row.
    out_ref[...] = jnp.dot(hi * hj, seg_ref[...],
                           preferred_element_type=jnp.float32).astype(out_ref.dtype)


def mlp_dot_predictor(x_i, x_j, params, *, tm=1024, mxu_dtype=jnp.bfloat16):
    """params: list of (W, b) with W pre-transposed to (in, out), b shaped (1, out)."""
    assert x_i.shape == x_j.shape
    N, C = x_i.shape
    num_layers = len(params)
    H = params[0][0].shape[1]
    for w, _ in params[1:]:
        assert w.shape == (H, H)

    # Lane-pack P logical rows per vreg row so the tiny feature dims fill the lanes.
    P = max(1, 128 // max(C, H))
    row_align = 8 * P                            # packed row tiles need 8-sublane align

    # Tile selection: big tiles amortize per-step overhead; keep >= 2 grid steps for
    # medium N so both v7x TensorCores get work (harmless on single-TC v5e/v6e).
    if N <= row_align:
        tm = row_align
    elif N <= 2 * tm:
        tm = _round_up(-(-N // 2), row_align)
    else:
        tm = _round_up(tm, row_align)
    n_tiles = pl.cdiv(N, tm)
    Np = n_tiles * tm

    if Np != N:
        # TODO(synk): ragged tail handled by zero-padding (one extra HBM copy); an
        # in-kernel tail mask would avoid it but is not worth it at these sizes.
        pad = ((0, Np - N), (0, 0))
        x_i = jnp.pad(x_i, pad)
        x_j = jnp.pad(x_j, pad)

    # Pack rows: (Np, C) -> (Np/P, P*C) is a free row-major reshape (done in HBM).
    xpi = x_i.reshape(Np // P, P * C)
    xpj = x_j.reshape(Np // P, P * C)
    tmp = tm // P

    # Block-diagonal weight replication (mathematically exact), pre-cast once.
    eye_p = jnp.eye(P, dtype=jnp.float32)
    weight_args = []
    for w, b in params:
        wp = jnp.kron(eye_p, w.astype(jnp.float32)).astype(mxu_dtype)   # (P*in, P*out)
        bp = jnp.tile(b.astype(jnp.float32), (1, P))                    # (1, P*out)
        weight_args += [wp, bp]
    # Block-of-ones matrix for the segmented (per-logical-row) final reduction.
    seg = jnp.kron(eye_p, jnp.ones((H, 1), jnp.float32))                # (P*H, P)

    row_spec = lambda cols: pl.BlockSpec((tmp, cols), lambda i: (i, 0))
    full_spec = lambda a: pl.BlockSpec(a.shape, lambda i: (0,) * a.ndim)
    in_specs = ([row_spec(P * C), row_spec(P * C)]
                + [full_spec(a) for a in weight_args]
                + [full_spec(seg)])

    kernel = functools.partial(mlp_dot_kernel, num_layers=num_layers,
                               mxu_dtype=mxu_dtype)

    out = pl.pallas_call(
        kernel,
        out_shape=jax.ShapeDtypeStruct((Np // P, P), jnp.float32),
        grid_spec=pltpu.PrefetchScalarGridSpec(
            num_scalar_prefetch=0,
            grid=(n_tiles,),
            in_specs=in_specs,
            out_specs=row_spec(P),
        ),
        compiler_params=pltpu.CompilerParams(
            dimension_semantics=("parallel",),
        ),
    )(xpi, xpj, *weight_args, seg)

    return out.reshape(Np)[:N]


def init_params(key, in_channels, hidden_channels, num_layers):
    """PyTorch-Linear-style init; weights stored transposed (in, out)."""
    def linear_init(k, fan_in, fan_out):
        kw, kb = jax.random.split(k)
        bound = 1.0 / jnp.sqrt(fan_in)
        w = jax.random.uniform(kw, (fan_in, fan_out), jnp.float32, -bound, bound)
        b = jax.random.uniform(kb, (1, fan_out), jnp.float32, -bound, bound)
        return w, b

    dims = [in_channels] + [hidden_channels] * num_layers
    keys = jax.random.split(key, num_layers)
    return [linear_init(keys[l], dims[l], dims[l + 1]) for l in range(num_layers)]


def reference_forward(x_i, x_j, params):
    """Pure-JAX reference mirroring the PyTorch forward (eval mode), f32 HIGHEST."""
    hp = jax.lax.Precision.HIGHEST
    for w, b in params:
        x_i = jnp.maximum(jnp.dot(x_i, w, precision=hp) + b, 0.0)
        x_j = jnp.maximum(jnp.dot(x_j, w, precision=hp) + b, 0.0)
    return jnp.sum(x_i * x_j, axis=-1)


if __name__ == "__main__":
    # num_layers Linear layers (in->hidden, then hidden->hidden); dropout inert in eval.
    N, IN_CH, HID_CH, NUM_LAYERS = 1000, 16, 32, 3   # -> P=4 packing, grid of 2 tiles

    key = jax.random.PRNGKey(0)
    k_xi, k_xj, k_p = jax.random.split(key, 3)
    x_i = jax.random.normal(k_xi, (N, IN_CH), jnp.float32)
    x_j = jax.random.normal(k_xj, (N, IN_CH), jnp.float32)
    params = init_params(k_p, IN_CH, HID_CH, NUM_LAYERS)

    out = mlp_dot_predictor(x_i, x_j, params)
    out = jax.block_until_ready(out)

    ref = reference_forward(x_i, x_j, params)
    assert out.shape == (N,)
    # bf16 MXU operands -> looser tolerance vs. the f32 HIGHEST-precision reference.
    assert jnp.allclose(out, ref, atol=5e-2, rtol=5e-2), float(jnp.max(jnp.abs(out - ref)))

    print("KERNEL_OK")
</pallas_src>

<mosaic_0001>
module attributes {stable_mosaic.version = 11 : i64} {
  func.func @mlp_dot_kernel(%arg0: i32, %arg1: memref<128x64xf32, #tpu.memory_space<vmem>>, %arg2: memref<128x64xf32, #tpu.memory_space<vmem>>, %arg3: memref<64x128xbf16, #tpu.memory_space<vmem>>, %arg4: memref<1x128xf32, #tpu.memory_space<vmem>>, %arg5: memref<128x128xbf16, #tpu.memory_space<vmem>>, %arg6: memref<1x128xf32, #tpu.memory_space<vmem>>, %arg7: memref<128x128xbf16, #tpu.memory_space<vmem>>, %arg8: memref<1x128xf32, #tpu.memory_space<vmem>>, %arg9: memref<128x4xf32, #tpu.memory_space<vmem>>, %arg10: memref<128x4xf32, #tpu.memory_space<vmem>>) attributes {dimension_semantics = [#tpu.dimension_semantics<parallel>], iteration_bounds = array<i64: 2>, scalar_prefetch = 0 : i64, scratch_operands = 0 : i64, tpu.core_type = #tpu.core_type<tc>, window_params = [{transform_indices = @transform_0, window_bounds = array<i64: 128, 64>}, {transform_indices = @transform_1, window_bounds = array<i64: 128, 64>}, {pipeline_mode = #tpu.pipeline_mode<synchronous>, transform_indices = @transform_2, window_bounds = array<i64: 64, 128>}, {pipeline_mode = #tpu.pipeline_mode<synchronous>, transform_indices = @transform_3, window_bounds = array<i64: 1, 128>}, {pipeline_mode = #tpu.pipeline_mode<synchronous>, transform_indices = @transform_4, window_bounds = array<i64: 128, 128>}, {pipeline_mode = #tpu.pipeline_mode<synchronous>, transform_indices = @transform_5, window_bounds = array<i64: 1, 128>}, {pipeline_mode = #tpu.pipeline_mode<synchronous>, transform_indices = @transform_6, window_bounds = array<i64: 128, 128>}, {pipeline_mode = #tpu.pipeline_mode<synchronous>, transform_indices = @transform_7, window_bounds = array<i64: 1, 128>}, {pipeline_mode = #tpu.pipeline_mode<synchronous>, transform_indices = @transform_8, window_bounds = array<i64: 128, 4>}, {transform_indices = @transform_9, window_bounds = array<i64: 128, 4>}]} {
    %c0 = arith.constant 0 : index
    %c0_0 = arith.constant 0 : index
    %0 = vector.load %arg1[%c0, %c0_0] : memref<128x64xf32, #tpu.memory_space<vmem>>, vector<128x64xf32>
    %c0_1 = arith.constant 0 : index
    %c0_2 = arith.constant 0 : index
    %1 = vector.load %arg2[%c0_1, %c0_2] : memref<128x64xf32, #tpu.memory_space<vmem>>, vector<128x64xf32>
    %c0_3 = arith.constant 0 : index
    %c0_4 = arith.constant 0 : index
    %2 = vector.load %arg3[%c0_3, %c0_4] : memref<64x128xbf16, #tpu.memory_space<vmem>>, vector<64x128xbf16>
    %c0_5 = arith.constant 0 : index
    %c0_6 = arith.constant 0 : index
    %3 = vector.load %arg4[%c0_5, %c0_6] : memref<1x128xf32, #tpu.memory_space<vmem>>, vector<1x128xf32>
    %4 = arith.truncf %0 : vector<128x64xf32> to vector<128x64xbf16>
    %cst = arith.constant dense<0.000000e+00> : vector<128x128xf32>
    %5 = tpu.matmul %4, %2, %cst {dimension_numbers = #tpu.dot_dimension_numbers<[1], [0], [0], [1], [0, 0, 1, 1], [], []>} : vector<128x64xbf16>, vector<64x128xbf16>, vector<128x128xf32> -> vector<128x128xf32>
    %6 = vector.broadcast %3 : vector<1x128xf32> to vector<128x128xf32>
    %7 = arith.addf %5, %6 : vector<128x128xf32>
    %cst_7 = arith.constant 0.000000e+00 : f32
    %8 = vector.broadcast %cst_7 : f32 to vector<128x128xf32>
    %9 = arith.maximumf %7, %8 : vector<128x128xf32>
    %10 = arith.truncf %1 : vector<128x64xf32> to vector<128x64xbf16>
    %cst_8 = arith.constant dense<0.000000e+00> : vector<128x128xf32>
    %11 = tpu.matmul %10, %2, %cst_8 {dimension_numbers = #tpu.dot_dimension_numbers<[1], [0], [0], [1], [0, 0, 1, 1], [], []>} : vector<128x64xbf16>, vector<64x128xbf16>, vector<128x128xf32> -> vector<128x128xf32>
    %12 = vector.broadcast %3 : vector<1x128xf32> to vector<128x128xf32>
    %13 = arith.addf %11, %12 : vector<128x128xf32>
    %cst_9 = arith.constant 0.000000e+00 : f32
    %14 = vector.broadcast %cst_9 : f32 to vector<128x128xf32>
    %15 = arith.maximumf %13, %14 : vector<128x128xf32>
    %c0_10 = arith.constant 0 : index
    %c0_11 = arith.constant 0 : index
    %16 = vector.load %arg5[%c0_10, %c0_11] : memref<128x128xbf16, #tpu.memory_space<vmem>>, vector<128x128xbf16>
    %c0_12 = arith.constant 0 : index
    %c0_13 = arith.constant 0 : index
    %17 = vector.load %arg6[%c0_12, %c0_13] : memref<1x128xf32, #tpu.memory_space<vmem>>, vector<1x128xf32>
    %18 = arith.truncf %9 : vector<128x128xf32> to vector<128x128xbf16>
    %cst_14 = arith.constant dense<0.000000e+00> : vector<128x128xf32>
    %19 = tpu.matmul %18, %16, %cst_14 {dimension_numbers = #tpu.dot_dimension_numbers<[1], [0], [0], [1], [0, 0, 1, 1], [], []>} : vector<128x128xbf16>, vector<128x128xbf16>, vector<128x128xf32> -> vector<128x128xf32>
    %20 = vector.broadcast %17 : vector<1x128xf32> to vector<128x128xf32>
    %21 = arith.addf %19, %20 : vector<128x128xf32>
    %cst_15 = arith.constant 0.000000e+00 : f32
    %22 = vector.broadcast %cst_15 : f32 to vector<128x128xf32>
    %23 = arith.maximumf %21, %22 : vector<128x128xf32>
    %24 = arith.truncf %15 : vector<128x128xf32> to vector<128x128xbf16>
    %cst_16 = arith.constant dense<0.000000e+00> : vector<128x128xf32>
    %25 = tpu.matmul %24, %16, %cst_16 {dimension_numbers = #tpu.dot_dimension_numbers<[1], [0], [0], [1], [0, 0, 1, 1], [], []>} : vector<128x128xbf16>, vector<128x128xbf16>, vector<128x128xf32> -> vector<128x128xf32>
    %26 = vector.broadcast %17 : vector<1x128xf32> to vector<128x128xf32>
    %27 = arith.addf %25, %26 : vector<128x128xf32>
    %cst_17 = arith.constant 0.000000e+00 : f32
    %28 = vector.broadcast %cst_17 : f32 to vector<128x128xf32>
    %29 = arith.maximumf %27, %28 : vector<128x128xf32>
    %c0_18 = arith.constant 0 : index
    %c0_19 = arith.constant 0 : index
    %30 = vector.load %arg7[%c0_18, %c0_19] : memref<128x128xbf16, #tpu.memory_space<vmem>>, vector<128x128xbf16>
    %c0_20 = arith.constant 0 : index
    %c0_21 = arith.constant 0 : index
    %31 = vector.load %arg8[%c0_20, %c0_21] : memref<1x128xf32, #tpu.memory_space<vmem>>, vector<1x128xf32>
    %32 = arith.truncf %23 : vector<128x128xf32> to vector<128x128xbf16>
    %cst_22 = arith.constant dense<0.000000e+00> : vector<128x128xf32>
    %33 = tpu.matmul %32, %30, %cst_22 {dimension_numbers = #tpu.dot_dimension_numbers<[1], [0], [0], [1], [0, 0, 1, 1], [], []>} : vector<128x128xbf16>, vector<128x128xbf16>, vector<128x128xf32> -> vector<128x128xf32>
    %34 = vector.broadcast %31 : vector<1x128xf32> to vector<128x128xf32>
    %35 = arith.addf %33, %34 : vector<128x128xf32>
    %cst_23 = arith.constant 0.000000e+00 : f32
    %36 = vector.broadcast %cst_23 : f32 to vector<128x128xf32>
    %37 = arith.maximumf %35, %36 : vector<128x128xf32>
    %38 = arith.truncf %29 : vector<128x128xf32> to vector<128x128xbf16>
    %cst_24 = arith.constant dense<0.000000e+00> : vector<128x128xf32>
    %39 = tpu.matmul %38, %30, %cst_24 {dimension_numbers = #tpu.dot_dimension_numbers<[1], [0], [0], [1], [0, 0, 1, 1], [], []>} : vector<128x128xbf16>, vector<128x128xbf16>, vector<128x128xf32> -> vector<128x128xf32>
    %40 = vector.broadcast %31 : vector<1x128xf32> to vector<128x128xf32>
    %41 = arith.addf %39, %40 : vector<128x128xf32>
    %cst_25 = arith.constant 0.000000e+00 : f32
    %42 = vector.broadcast %cst_25 : f32 to vector<128x128xf32>
    %43 = arith.maximumf %41, %42 : vector<128x128xf32>
    %44 = arith.mulf %37, %43 : vector<128x128xf32>
    %c0_26 = arith.constant 0 : index
    %c0_27 = arith.constant 0 : index
    %45 = vector.load %arg9[%c0_26, %c0_27] : memref<128x4xf32, #tpu.memory_space<vmem>>, vector<128x4xf32>
    %cst_28 = arith.constant dense<0.000000e+00> : vector<128x4xf32>
    %46 = tpu.matmul %44, %45, %cst_28 {dimension_numbers = #tpu.dot_dimension_numbers<[1], [0], [0], [1], [0, 0, 1, 1], [], []>} : vector<128x128xf32>, vector<128x4xf32>, vector<128x4xf32> -> vector<128x4xf32>
    %c0_29 = arith.constant 0 : index
    %c0_30 = arith.constant 0 : index
    %47 = vector.load %arg10[%c0_29, %c0_30] : memref<128x4xf32, #tpu.memory_space<vmem>>, vector<128x4xf32>
    tpu.vector_store %arg10[%c0_29, %c0_30], %46 {strides = array<i32>} : memref<128x4xf32, #tpu.memory_space<vmem>>, vector<128x4xf32>,
    return
  }
  func.func @transform_0(%arg0: i32) -> (i32, i32) {
    %c0_i32 = arith.constant 0 : i32
    %c0_i32_0 = arith.constant 0 : i32
    return %arg0, %c0_i32 : i32, i32
  }
  func.func @transform_1(%arg0: i32) -> (i32, i32) {
    %c0_i32 = arith.constant 0 : i32
    %c0_i32_0 = arith.constant 0 : i32
    return %arg0, %c0_i32 : i32, i32
  }
  func.func @transform_2(%arg0: i32) -> (i32, i32) {
    %c0_i32 = arith.constant 0 : i32
    %c0_i32_0 = arith.constant 0 : i32
    %c0_i32_1 = arith.constant 0 : i32
    return %c0_i32, %c0_i32_0 : i32, i32
  }
  func.func @transform_3(%arg0: i32) -> (i32, i32) {
    %c0_i32 = arith.constant 0 : i32
    %c0_i32_0 = arith.constant 0 : i32
    %c0_i32_1 = arith.constant 0 : i32
    return %c0_i32, %c0_i32_0 : i32, i32
  }
  func.func @transform_4(%arg0: i32) -> (i32, i32) {
    %c0_i32 = arith.constant 0 : i32
    %c0_i32_0 = arith.constant 0 : i32
    %c0_i32_1 = arith.constant 0 : i32
    return %c0_i32, %c0_i32_0 : i32, i32
  }
  func.func @transform_5(%arg0: i32) -> (i32, i32) {
    %c0_i32 = arith.constant 0 : i32
    %c0_i32_0 = arith.constant 0 : i32
    %c0_i32_1 = arith.constant 0 : i32
    return %c0_i32, %c0_i32_0 : i32, i32
  }
  func.func @transform_6(%arg0: i32) -> (i32, i32) {
    %c0_i32 = arith.constant 0 : i32
    %c0_i32_0 = arith.constant 0 : i32
    %c0_i32_1 = arith.constant 0 : i32
    return %c0_i32, %c0_i32_0 : i32, i32
  }
  func.func @transform_7(%arg0: i32) -> (i32, i32) {
    %c0_i32 = arith.constant 0 : i32
    %c0_i32_0 = arith.constant 0 : i32
    %c0_i32_1 = arith.constant 0 : i32
    return %c0_i32, %c0_i32_0 : i32, i32
  }
  func.func @transform_8(%arg0: i32) -> (i32, i32) {
    %c0_i32 = arith.constant 0 : i32
    %c0_i32_0 = arith.constant 0 : i32
    %c0_i32_1 = arith.constant 0 : i32
    return %c0_i32, %c0_i32_0 : i32, i32
  }
  func.func @transform_9(%arg0: i32) -> (i32, i32) {
    %c0_i32 = arith.constant 0 : i32
    %c0_i32_0 = arith.constant 0 : i32
    return %arg0, %c0_i32 : i32, i32
  }
}

</mosaic_0001>

<bundles_post_ra>
// kernel: tpu_custom_call.1
= control target key start
LH: loop header
LB: loop body
LE: loop exit
PB: predicated region body
PF: predicated region fallthrough
CT: control target
= control target key end

     0   :  { %s2147_s30 = smov 0   ;;  %s2477_s0 = inlined_call_operand.vmem [shape: f32[256,64], index: 0, kind: input, shape index: {}]   ;;  %s2478_s1 = inlined_call_operand.vmem [shape: f32[256,64], index: 1, kind: input, shape index: {}]   ;;  %s2479_s2 = inlined_call_operand.vmem [shape: bf16[64,128], index: 2, kind: input, shape index: {}]   ;;  %s2480_s3 = inlined_call_operand.vmem [shape: f32[1,128], index: 3, kind: input, shape index: {}]   ;;  %s2481_s4 = inlined_call_operand.vmem [shape: bf16[128,128], index: 4, kind: input, shape index: {}]   ;;  %s2482_s5 = inlined_call_operand.vmem [shape: f32[1,128], index: 5, kind: input, shape index: {}]   ;;  %s2483_s6 = inlined_call_operand.vmem [shape: bf16[128,128], index: 6, kind: input, shape index: {}]   ;;  %s2484_s7 = inlined_call_operand.vmem [shape: f32[1,128], index: 7, kind: input, shape index: {}]   ;;  %s2485_s8 = inlined_call_operand.vmem [shape: f32[128,4], index: 8, kind: input, shape index: {}]   ;;  %s2486_s9 = inlined_call_operand.vmem [shape: f32[256,4], index: 9, kind: output, shape index: {}]  }
   0x1 LB: > { %s1609_s10 = sadd.s32 4294967295, %s2095_s30   ;;  %p1613_p0 = scmp.ge.s32.totalorder %s2095_s30, 1  ;;  %s2095_s30 = sphi %s2147_s30, %s19_s30  }
   0x2   : > { %p299_p1 = scmp.lt.s32.totalorder %s2095_s30, 3 }
   0x4   : > { %p300_p2 = pnand %p1613_p0, %p299_p1 }
   0x5   : > { %v2069_v0 = vld [vmem:[%s2479_s2] sm:$0xff] (!%p300_p2)   ;;  %s1614_s13 = sshll.u32 (!%p300_p2), %s1609_s10, 4  ;;  %v2070_v1 = vld [vmem:[%s2479_s2 + $0x8] sm:$0xff] (!%p300_p2)   ;;  %v2071_v2 = vld [vmem:[%s2479_s2 + $0x10] sm:$0xff] (!%p300_p2)   ;;  %vm438_vm0 = vcmask (!%p300_p2), 523264   ;;  %vm1524_vm1 = vcmask (!%p300_p2), 31744  }
   0x6   : > { %303 = sbr.rel (%p300_p2) target bundleno = 930 (0x3a2), region = 56  ;;  %p341_p3 = scmp.lt.s32.totalorder (!%p300_p2), %s1614_s13, 31  ;;  %1781 = vmatprep.subr.bf16.mxu0 (!%p300_p2), %v2069_v0  ;;  %1805 = vmatprep.subr.bf16.mxu1 (!%p300_p2), %v2069_v0  ;;  %v2072_v6 = vld [vmem:[%s2479_s2 + $0x18] sm:$0xff] (!%p300_p2)   ;;  %v2073_v12 = vld [vmem:[%s2481_s4] sm:$0xff] (!%p300_p2)   ;;  %v2074_v23 = vld [vmem:[%s2481_s4 + $0x8] sm:$0xff] (!%p300_p2)  }
   0x7   : > { %1782 = vmatpush3.bf16.msra.mxu0 (!%p300_p2), %v2069_v0  ;;  %1806 = vmatpush3.bf16.msra.mxu1 (!%p300_p2), %v2069_v0  ;;  %v2075_v31 = vld [vmem:[%s2481_s4 + $0x10] sm:$0xff] (!%p300_p2)   ;;  %v2076_v37 = vld [vmem:[%s2481_s4 + $0x18] sm:$0xff] (!%p300_p2)   ;;  %v2077_v46 = vld [vmem:[%s2481_s4 + $0x20] sm:$0xff] (!%p300_p2)  }
   0x8   : > { %1783 = vmatprep.subr.bf16.mxu0 (!%p300_p2), %v2070_v1  ;;  %1807 = vmatprep.subr.bf16.mxu1 (!%p300_p2), %v2070_v1  ;;  %v2078_v51 = vld [vmem:[%s2481_s4 + $0x28] sm:$0xff] (!%p300_p2)   ;;  %v2079_v58 = vld [vmem:[%s2481_s4 + $0x30] sm:$0xff] (!%p300_p2)   ;;  %v2080_v59 = vld [vmem:[%s2481_s4 + $0x38] sm:$0xff] (!%p300_p2)  }
   0x9   : > { %v2081_v60 = vld [vmem:[%s2483_s6] sm:$0xff] (!%p300_p2)  }
   0xa   : > { %v2259_v61 = vld [vmem:[%s2480_s3] ss:$0 sm:$0xff] (!%p300_p2) }
   0xb   : > { %1784 = vmatpush3.bf16.msra.mxu0 (!%p300_p2), %v2070_v1  ;;  %1808 = vmatpush3.bf16.msra.mxu1 (!%p300_p2), %v2070_v1 }
   0xc   : > { %1785 = vmatprep.subr.bf16.mxu0 (!%p300_p2), %v2071_v2  ;;  %1809 = vmatprep.subr.bf16.mxu1 (!%p300_p2), %v2071_v2 }
   0xd   : > { %s2488_s13 = smov (!%p341_p3, %s1614_s13), 31 }
   0xe   : > { %s2164_s18 = sshll.u32 %s2488_s13, 3 }
   0xf   : > { %s2170_s21 = scalar_lea.vmem %s2477_s0, %s2164_s18  ;;  %s2176_s24 = scalar_lea.vmem %s2478_s1, %s2164_s18  ;;  %1786 = vmatpush3.bf16.msra.mxu0 %v2071_v2  ;;  %1810 = vmatpush3.bf16.msra.mxu1 %v2071_v2 }
  0x10   : > { %v359_v3 = vld [vmem:[%s2170_s21] sm:$0xff]  ;;  %v360_v4 = vld [vmem:[%s2170_s21 + $0x8] sm:$0xff]  ;;  %v361_v10 = vld [vmem:[%s2170_s21 + $0x10] sm:$0xff]  ;;  %1787 = vmatprep.subr.bf16.mxu0 %v2072_v6  ;;  %1811 = vmatprep.subr.bf16.mxu1 %v2072_v6  ;;  %s2440_s23 = scalar_lea.vmem %s2486_s9, %s2164_s18 }
  0x11   : > { %v375_v5 = vld [vmem:[%s2176_s24] sm:$0xff]  ;;  %v400_v7 = vpack.c.bf16 %v360_v4, %v359_v3  ;;  %v376_v8 = vld [vmem:[%s2176_s24 + $0x8] sm:$0xff]  ;;  %v362_v11 = vld [vmem:[%s2170_s21 + $0x18] sm:$0xff] }
  0x12   : > { %v576_v9 = vpack.c.bf16 %v376_v8, %v375_v5  ;;  %v377_v13 = vld [vmem:[%s2176_s24 + $0x10] sm:$0xff]  ;;  %v378_v14 = vld [vmem:[%s2176_s24 + $0x18] sm:$0xff]  ;;  %v363_v15 = vld [vmem:[%s2170_s21 + $0x20] sm:$0xff]  ;;  %v401_v19 = vpack.c.bf16 %v362_v11, %v361_v10 }
  0x13   : > { %1789 = vmatprep.mubr.msk.bf16.mxu0 %vm438_vm0, %v400_v7  ;;  %v364_v16 = vld [vmem:[%s2170_s21 + $0x28] sm:$0xff]  ;;  %v379_v17 = vld [vmem:[%s2176_s24 + $0x20] sm:$0xff]  ;;  %v577_v20 = vpack.c.bf16 %v378_v14, %v377_v13  ;;  %1788 = vmatpush3.bf16.msra.mxu0 %v2072_v6  ;;  %v365_v24 = vld [vmem:[%s2170_s21 + $0x30] sm:$0xff] }
  0x14   : > { %v380_v18 = vld [vmem:[%s2176_s24 + $0x28] sm:$0xff]  ;;  %1813 = vmatprep.mubr.msk.bf16.mxu1 %vm438_vm0, %v576_v9  ;;  %1812 = vmatpush3.bf16.msra.mxu1 %v2072_v6  ;;  %v402_v21 = vpack.c.bf16 %v364_v16, %v363_v15  ;;  %v366_v25 = vld [vmem:[%s2170_s21 + $0x38] sm:$0xff]  ;;  %v381_v26 = vld [vmem:[%s2176_s24 + $0x30] sm:$0xff] }
  0x15   : > { %v578_v22 = vpack.c.bf16 %v380_v18, %v379_v17  ;;  %1829 = vmatprep.subr.bf16.mxu0 %v2073_v12  ;;  %1861 = vmatprep.subr.bf16.mxu1 %v2073_v12  ;;  %v382_v27 = vld [vmem:[%s2176_s24 + $0x38] sm:$0xff]  ;;  %v367_v28 = vld [vmem:[%s2170_s21 + $0x40] sm:$0xff]  ;;  %v368_v29 = vld [vmem:[%s2170_s21 + $0x48] sm:$0xff]  ;;  %v403_v33 = vpack.c.bf16 %v366_v25, %v365_v24 }
  0x16   : > { %1790 = vmatmul.mubr.msk.bf16.vlgmr.msra.gmra.mrb[0].mxu0 %vm438_vm0, %v401_v19  ;;  %v383_v30 = vld [vmem:[%s2176_s24 + $0x40] sm:$0xff]  ;;  %v384_v32 = vld [vmem:[%s2176_s24 + $0x48] sm:$0xff]  ;;  %v579_v34 = vpack.c.bf16 %v382_v27, %v381_v26  ;;  %v404_v35 = vpack.c.bf16 %v368_v29, %v367_v28  ;;  %v369_v38 = vld [vmem:[%s2170_s21 + $0x50] sm:$0xff] }
  0x17   : > { %1814 = vmatmul.mubr.msk.bf16.vlgmr.msra.gmra.mrb[0].mxu1 %vm438_vm0, %v577_v20  ;;  %1793 = vmatprep.mubr.msk.bf16.mxu0 %vm438_vm0, %v402_v21  ;;  %v580_v36 = vpack.c.bf16 %v384_v32, %v383_v30  ;;  %v370_v39 = vld [vmem:[%s2170_s21 + $0x58] sm:$0xff]  ;;  %v385_v40 = vld [vmem:[%s2176_s24 + $0x50] sm:$0xff]  ;;  %v371_v42 = vld [vmem:[%s2170_s21 + $0x60] sm:$0xff] }
  0x18   : > { %1817 = vmatprep.mubr.msk.bf16.mxu1 %vm438_vm0, %v578_v22  ;;  %1830 = vmatpush3.bf16.msra.mxu0 %v2073_v12  ;;  %v386_v41 = vld [vmem:[%s2176_s24 + $0x58] sm:$0xff]  ;;  %v372_v43 = vld [vmem:[%s2170_s21 + $0x68] sm:$0xff]  ;;  %v387_v44 = vld [vmem:[%s2176_s24 + $0x60] sm:$0xff]  ;;  %v405_v47 = vpack.c.bf16 %v370_v39, %v369_v38 }
  0x19   : > { %1862 = vmatpush3.bf16.msra.mxu1 %v2073_v12  ;;  %1831 = vmatprep.subr.bf16.mxu0 %v2074_v23  ;;  %v388_v45 = vld [vmem:[%s2176_s24 + $0x68] sm:$0xff]  ;;  %v581_v48 = vpack.c.bf16 %v386_v41, %v385_v40  ;;  %v406_v49 = vpack.c.bf16 %v372_v43, %v371_v42  ;;  %v373_v52 = vld [vmem:[%s2170_s21 + $0x70] sm:$0xff]  ;;  %v374_v53 = vld [vmem:[%s2170_s21 + $0x78] sm:$0xff] }
  0x1a   : > { %1863 = vmatprep.subr.bf16.mxu1 %v2074_v23  ;;  %v582_v50 = vpack.c.bf16 %v388_v45, %v387_v44  ;;  %v389_v54 = vld [vmem:[%s2176_s24 + $0x70] sm:$0xff]  ;;  %v390_v55 = vld [vmem:[%s2176_s24 + $0x78] sm:$0xff]  ;;  %v407_v56 = vpack.c.bf16 %v374_v53, %v373_v52  ;;  %v2082_v32 = vld [vmem:[%s2483_s6 + $0x8] sm:$0xff]  }
  0x1b   : > { %v583_v57 = vpack.c.bf16 %v390_v55, %v389_v54 }
  0x1c   : > { %1832 = vmatpush3.bf16.msra.mxu0 %v2074_v23 }
  0x1d   : > { %1864 = vmatpush3.bf16.msra.mxu1 %v2074_v23  ;;  %1833 = vmatprep.subr.bf16.mxu0 %v2075_v31 }
  0x1e   : > { %1865 = vmatprep.subr.bf16.mxu1 %v2075_v31  ;;  %1794 = vmatmul.mubr.msk.bf16.gmra.mrb[4].mxu0 %vm438_vm0, %v403_v33 }
  0x1f   : > { %1818 = vmatmul.mubr.msk.bf16.gmra.mrb[4].mxu1 %vm438_vm0, %v579_v34  ;;  %1797 = vmatprep.mubr.msk.bf16.mxu0 %vm438_vm0, %v404_v35 }
  0x20   : > { %1821 = vmatprep.mubr.msk.bf16.mxu1 %vm438_vm0, %v580_v36  ;;  %1834 = vmatpush3.bf16.msra.mxu0 %v2075_v31 }
  0x21   : > { %1866 = vmatpush3.bf16.msra.mxu1 %v2075_v31  ;;  %1835 = vmatprep.subr.bf16.mxu0 %v2076_v37 }
  0x22   : > { %1867 = vmatprep.subr.bf16.mxu1 %v2076_v37 }
  0x24   : > { %1836 = vmatpush3.bf16.msra.mxu0 %v2076_v37 }
  0x25   : > { %1868 = vmatpush3.bf16.msra.mxu1 %v2076_v37  ;;  %1837 = vmatprep.subr.bf16.mxu0 %v2077_v46 }
  0x26   : > { %1869 = vmatprep.subr.bf16.mxu1 %v2077_v46  ;;  %1798 = vmatmul.mubr.msk.bf16.gmra.mrb[8].mxu0 %vm438_vm0, %v405_v47  ;;  %v2083_v47 = vld [vmem:[%s2483_s6 + $0x10] sm:$0xff]  }
  0x27   : > { %1822 = vmatmul.mubr.msk.bf16.gmra.mrb[8].mxu1 %vm438_vm0, %v581_v48  ;;  %1801 = vmatprep.mubr.msk.bf16.mxu0 %vm438_vm0, %v406_v49 }
  0x28   : > { %1825 = vmatprep.mubr.msk.bf16.mxu1 %vm438_vm0, %v582_v50  ;;  %1838 = vmatpush3.bf16.msra.mxu0 %v2077_v46 }
  0x29   : > { %1870 = vmatpush3.bf16.msra.mxu1 %v2077_v46  ;;  %1839 = vmatprep.subr.bf16.mxu0 %v2078_v51 }
  0x2a   : > { %1871 = vmatprep.subr.bf16.mxu1 %v2078_v51 }
  0x2c   : > { %1840 = vmatpush3.bf16.msra.mxu0 %v2078_v51 }
  0x2d   : > { %1872 = vmatpush3.bf16.msra.mxu1 %v2078_v51  ;;  %1841 = vmatprep.subr.bf16.mxu0 %v2079_v58 }
  0x2e   : > { %1802 = vmatmul.mubr.msk.bf16.gmra.mrb[12].mxu0 %vm438_vm0, %v407_v56  ;;  %1873 = vmatprep.subr.bf16.mxu1 %v2079_v58 }
  0x2f   : > { %1826 = vmatmul.mubr.msk.bf16.gmra.mrb[12].mxu1 %vm438_vm0, %v583_v57 }
  0x30   : > { %1842 = vmatpush3.bf16.msra.mxu0 %v2079_v58 }
  0x31   : > { %1874 = vmatpush3.bf16.msra.mxu1 %v2079_v58  ;;  %1843 = vmatprep.subr.bf16.mxu0 %v2080_v59 }
  0x32   : > { %1875 = vmatprep.subr.bf16.mxu1 %v2080_v59 }
  0x34   : > { %1844 = vmatpush3.bf16.msra.mxu0 %v2080_v59 }
  0x35   : > { %1876 = vmatpush3.bf16.msra.mxu1 %v2080_v59  ;;  %1893 = vmatprep.subr.bf16.mxu0 %v2081_v60 }
  0x36   : > { %1925 = vmatprep.subr.bf16.mxu1 %v2081_v60 }
  0xe9   : > { %v1791_v62 = vpop.f32.mrb[0].mxu0 }
  0xea   : > { %v1815_v63 = vpop.f32.mrb[0].mxu1  ;;  %v506_v0 = vadd.f32 %v1791_v62, %v2259_v61  ;;  %v497_v2 = vpop.f32.mrb[1].mxu0 }
  0xeb   : > { %v651_v1 = vadd.f32 %v1815_v63, %v2259_v61  ;;  %v642_v3 = vpop.f32.mrb[1].mxu1  ;;  %v498_v4 = vadd.f32 %v2259_v61, %v497_v2  ;;  %v1792_v6 = vpop.f32.mrb[2].mxu0  ;;  %v2084_v63 = vld [vmem:[%s2483_s6 + $0x18] sm:$0xff]  }
  0xec   : > { %v643_v5 = vadd.f32 %v2259_v61, %v642_v3  ;;  %v1816_v7 = vpop.f32.mrb[2].mxu1  ;;  %v509_v8 = vadd.f32 %v1792_v6, %v2259_v61  ;;  %v500_v10 = vpop.f32.mrb[3].mxu0  ;;  %v562_v14 = vmax.f32 %v506_v0, 0.0 }
  0xed   : > { %v654_v9 = vadd.f32 %v1816_v7, %v2259_v61  ;;  %v645_v11 = vpop.f32.mrb[3].mxu1  ;;  %v501_v12 = vadd.f32 %v2259_v61, %v500_v10  ;;  %v707_v15 = vmax.f32 %v651_v1, 0.0  ;;  %v560_v18 = vmax.f32 %v498_v4, 0.0 }
  0xee   : > { %v646_v13 = vadd.f32 %v2259_v61, %v645_v11  ;;  %v563_v16 = vmax.f32 %v509_v8, 0.0  ;;  %v705_v19 = vmax.f32 %v643_v5, 0.0 }
  0xef   : > { %v708_v17 = vmax.f32 %v654_v9, 0.0  ;;  %v561_v20 = vmax.f32 %v501_v12, 0.0 }
  0xf0   : > { %v706_v21 = vmax.f32 %v646_v13, 0.0  ;;  %v739_v22 = vpack.c.bf16 %v563_v16, %v562_v14  ;;  %v2085_v14 = vld [vmem:[%s2483_s6 + $0x20] sm:$0xff]  }
  0xf1   : > { %v914_v23 = vpack.c.bf16 %v708_v17, %v707_v15  ;;  %v738_v24 = vpack.c.bf16 %v561_v20, %v560_v18  ;;  %v1795_v26 = vpop.f32.mrb[4].mxu0 }
  0xf2   : > { %v913_v25 = vpack.c.bf16 %v706_v21, %v705_v19  ;;  %v1819_v27 = vpop.f32.mrb[4].mxu1  ;;  %v522_v28 = vadd.f32 %v1795_v26, %v2259_v61  ;;  %v513_v30 = vpop.f32.mrb[5].mxu0 }
  0xf3   : > { %v667_v29 = vadd.f32 %v1819_v27, %v2259_v61  ;;  %v658_v31 = vpop.f32.mrb[5].mxu1  ;;  %v514_v33 = vadd.f32 %v2259_v61, %v513_v30  ;;  %v1796_v35 = vpop.f32.mrb[6].mxu0  ;;  %1845 = vmatprep.mubr.bf16.mxu0 %v738_v24 }
  0xf4   : > { %v659_v34 = vadd.f32 %v2259_v61, %v658_v31  ;;  %v1820_v36 = vpop.f32.mrb[6].mxu1  ;;  %1877 = vmatprep.mubr.bf16.mxu1 %v913_v25  ;;  %v525_v37 = vadd.f32 %v1796_v35, %v2259_v61  ;;  %v516_v39 = vpop.f32.mrb[7].mxu0  ;;  %1846 = vmatmul.mubr.bf16.vlgmr.msra.gmra.mrb[16].mxu0 %v739_v22  ;;  %v566_v43 = vmax.f32 %v522_v28, 0.0 }
  0xf5   : > { %v670_v38 = vadd.f32 %v1820_v36, %v2259_v61  ;;  %v661_v40 = vpop.f32.mrb[7].mxu1  ;;  %1878 = vmatmul.mubr.bf16.vlgmr.msra.gmra.mrb[16].mxu1 %v914_v23  ;;  %v517_v41 = vadd.f32 %v2259_v61, %v516_v39  ;;  %1894 = vmatpush3.bf16.msra.mxu0 %v2081_v60  ;;  %v711_v44 = vmax.f32 %v667_v29, 0.0  ;;  %v564_v48 = vmax.f32 %v514_v33, 0.0  ;;  %v2086_v29 = vld [vmem:[%s2483_s6 + $0x28] sm:$0xff]  }
  0xf6   : > { %v662_v42 = vadd.f32 %v2259_v61, %v661_v40  ;;  %1926 = vmatpush3.bf16.msra.mxu1 %v2081_v60  ;;  %v567_v45 = vmax.f32 %v525_v37, 0.0  ;;  %1895 = vmatprep.subr.bf16.mxu0 %v2082_v32  ;;  %v709_v49 = vmax.f32 %v659_v34, 0.0 }
  0xf7   : > { %v712_v46 = vmax.f32 %v670_v38, 0.0  ;;  %1927 = vmatprep.subr.bf16.mxu1 %v2082_v32  ;;  %v565_v50 = vmax.f32 %v517_v41, 0.0 }
  0xf8   : > { %v710_v51 = vmax.f32 %v662_v42, 0.0  ;;  %v741_v52 = vpack.c.bf16 %v567_v45, %v566_v43 }
  0xf9   : > { %v916_v53 = vpack.c.bf16 %v712_v46, %v711_v44  ;;  %v740_v54 = vpack.c.bf16 %v565_v50, %v564_v48  ;;  %v1799_v56 = vpop.f32.mrb[8].mxu0  ;;  %1896 = vmatpush3.bf16.msra.mxu0 %v2082_v32 }
  0xfa   : > { %v915_v55 = vpack.c.bf16 %v710_v51, %v709_v49  ;;  %v1823_v57 = vpop.f32.mrb[8].mxu1  ;;  %1928 = vmatpush3.bf16.msra.mxu1 %v2082_v32  ;;  %v538_v58 = vadd.f32 %v1799_v56, %v2259_v61  ;;  %v529_v60 = vpop.f32.mrb[9].mxu0  ;;  %1897 = vmatprep.subr.bf16.mxu0 %v2083_v47  ;;  %v2323_v56 = vld [vmem:[%s2482_s5] ss:$0 sm:$0xff] }
  0xfb   : > { %v683_v59 = vadd.f32 %v1823_v57, %v2259_v61  ;;  %v674_v62 = vpop.f32.mrb[9].mxu1  ;;  %1929 = vmatprep.subr.bf16.mxu1 %v2083_v47  ;;  %v530_v0 = vadd.f32 %v2259_v61, %v529_v60  ;;  %v1800_v2 = vpop.f32.mrb[10].mxu0  ;;  %1849 = vmatprep.mubr.bf16.mxu0 %v740_v54  ;;  %v1364_v54 = vld [vmem:[%s2485_s8 + $0x8] sm:$0xff] }
  0xfc   : > { %v675_v1 = vadd.f32 %v2259_v61, %v674_v62  ;;  %v1824_v3 = vpop.f32.mrb[10].mxu1  ;;  %1881 = vmatprep.mubr.bf16.mxu1 %v915_v55  ;;  %v541_v4 = vadd.f32 %v1800_v2, %v2259_v61  ;;  %v532_v6 = vpop.f32.mrb[11].mxu0  ;;  %1850 = vmatmul.mubr.bf16.gmra.mrb[20].mxu0 %v741_v52  ;;  %v570_v10 = vmax.f32 %v538_v58, 0.0  ;;  %v2088_v52 = vld [vmem:[%s2483_s6 + $0x38] sm:$0xff]  }
  0xfd   : > { %v686_v5 = vadd.f32 %v1824_v3, %v2259_v61  ;;  %v677_v7 = vpop.f32.mrb[11].mxu1  ;;  %1882 = vmatmul.mubr.bf16.gmra.mrb[20].mxu1 %v916_v53  ;;  %v533_v8 = vadd.f32 %v2259_v61, %v532_v6  ;;  %1898 = vmatpush3.bf16.msra.mxu0 %v2083_v47  ;;  %v715_v11 = vmax.f32 %v683_v59, 0.0  ;;  %v568_v15 = vmax.f32 %v530_v0, 0.0  ;;  %v1363_v53 = vld [vmem:[%s2485_s8] sm:$0xff] }
  0xfe   : > { %v678_v9 = vadd.f32 %v2259_v61, %v677_v7  ;;  %1930 = vmatpush3.bf16.msra.mxu1 %v2083_v47  ;;  %v571_v12 = vmax.f32 %v541_v4, 0.0  ;;  %1899 = vmatprep.subr.bf16.mxu0 %v2084_v63  ;;  %v713_v16 = vmax.f32 %v675_v1, 0.0  ;;  %v2013_v55 = vpack.c.bf16 %v1364_v54, %v1363_v53 }
  0xff   : > { %v716_v13 = vmax.f32 %v686_v5, 0.0  ;;  %1931 = vmatprep.subr.bf16.mxu1 %v2084_v63  ;;  %v569_v17 = vmax.f32 %v533_v8, 0.0 }
 0x100   : > { %v714_v18 = vmax.f32 %v678_v9, 0.0  ;;  %v743_v19 = vpack.c.bf16 %v571_v12, %v570_v10 }
 0x101   : > { %v918_v20 = vpack.c.bf16 %v716_v13, %v715_v11  ;;  %v742_v21 = vpack.c.bf16 %v569_v17, %v568_v15  ;;  %v1803_v23 = vpop.f32.mrb[12].mxu0  ;;  %1900 = vmatpush3.bf16.msra.mxu0 %v2084_v63 }
 0x102   : > { %v917_v22 = vpack.c.bf16 %v714_v18, %v713_v16  ;;  %v1827_v24 = vpop.f32.mrb[12].mxu1  ;;  %1932 = vmatpush3.bf16.msra.mxu1 %v2084_v63  ;;  %v554_v25 = vadd.f32 %v1803_v23, %v2259_v61  ;;  %v545_v27 = vpop.f32.mrb[13].mxu0  ;;  %1901 = vmatprep.subr.bf16.mxu0 %v2085_v14  ;;  %v1365_v18 = vld [vmem:[%s2485_s8 + $0x10] sm:$0xff] }
 0x103   : > { %v699_v26 = vadd.f32 %v1827_v24, %v2259_v61  ;;  %v690_v28 = vpop.f32.mrb[13].mxu1  ;;  %1933 = vmatprep.subr.bf16.mxu1 %v2085_v14  ;;  %v546_v30 = vadd.f32 %v2259_v61, %v545_v27  ;;  %v1804_v32 = vpop.f32.mrb[14].mxu0  ;;  %1853 = vmatprep.mubr.bf16.mxu0 %v742_v21 }
 0x104   : > { %v691_v31 = vadd.f32 %v2259_v61, %v690_v28  ;;  %v1828_v33 = vpop.f32.mrb[14].mxu1  ;;  %1885 = vmatprep.mubr.bf16.mxu1 %v917_v22  ;;  %v557_v34 = vadd.f32 %v1804_v32, %v2259_v61  ;;  %v548_v36 = vpop.f32.mrb[15].mxu0  ;;  %1854 = vmatmul.mubr.bf16.gmra.mrb[24].mxu0 %v743_v19  ;;  %v574_v40 = vmax.f32 %v554_v25, 0.0  ;;  %v1366_v19 = vld [vmem:[%s2485_s8 + $0x18] sm:$0xff]  ;;  %v1368_v32 = vld [vmem:[%s2485_s8 + $0x28] sm:$0xff] }
 0x105   : > { %v702_v35 = vadd.f32 %v1828_v33, %v2259_v61  ;;  %v693_v37 = vpop.f32.mrb[15].mxu1  ;;  %1886 = vmatmul.mubr.bf16.gmra.mrb[24].mxu1 %v918_v20  ;;  %v549_v38 = vadd.f32 %v2259_v61, %v548_v36  ;;  %1902 = vmatpush3.bf16.msra.mxu0 %v2085_v14  ;;  %v719_v41 = vmax.f32 %v699_v26, 0.0  ;;  %v572_v44 = vmax.f32 %v546_v30, 0.0 }
 0x106   : > { %v694_v39 = vadd.f32 %v2259_v61, %v693_v37  ;;  %1934 = vmatpush3.bf16.msra.mxu1 %v2085_v14  ;;  %v575_v42 = vmax.f32 %v557_v34, 0.0  ;;  %1903 = vmatprep.subr.bf16.mxu0 %v2086_v29  ;;  %v717_v45 = vmax.f32 %v691_v31, 0.0  ;;  %v2087_v61 = vld [vmem:[%s2483_s6 + $0x30] sm:$0xff]   ;;  %v2017_v30 = vpack.c.bf16 %v1366_v19, %v1365_v18  ;;  %v1367_v31 = vld [vmem:[%s2485_s8 + $0x20] sm:$0xff] }
 0x107   : > { %v720_v43 = vmax.f32 %v702_v35, 0.0  ;;  %1935 = vmatprep.subr.bf16.mxu1 %v2086_v29  ;;  %v573_v46 = vmax.f32 %v549_v38, 0.0 }
 0x108   : > { %v718_v47 = vmax.f32 %v694_v39, 0.0  ;;  %v745_v48 = vpack.c.bf16 %v575_v42, %v574_v40 }
 0x109   : > { %v920_v49 = vpack.c.bf16 %v720_v43, %v719_v41  ;;  %v744_v50 = vpack.c.bf16 %v573_v46, %v572_v44  ;;  %1904 = vmatpush3.bf16.msra.mxu0 %v2086_v29  ;;  %v2021_v43 = vpack.c.bf16 %v1368_v32, %v1367_v31 }
 0x10a   : > { %v919_v51 = vpack.c.bf16 %v718_v47, %v717_v45  ;;  %1936 = vmatpush3.bf16.msra.mxu1 %v2086_v29  ;;  %1905 = vmatprep.subr.bf16.mxu0 %v2087_v61 }
 0x10b   : > { %1857 = vmatprep.mubr.bf16.mxu0 %v744_v50  ;;  %1937 = vmatprep.subr.bf16.mxu1 %v2087_v61 }
 0x10c   : > { %1889 = vmatprep.mubr.bf16.mxu1 %v919_v51  ;;  %1858 = vmatmul.mubr.bf16.gmra.mrb[28].mxu0 %v745_v48 }
 0x10d   : > { %1890 = vmatmul.mubr.bf16.gmra.mrb[28].mxu1 %v920_v49  ;;  %1906 = vmatpush3.bf16.msra.mxu0 %v2087_v61 }
 0x10e   : > { %1938 = vmatpush3.bf16.msra.mxu1 %v2087_v61  ;;  %1907 = vmatprep.subr.bf16.mxu0 %v2088_v52  ;;  %v1369_v61 = vld [vmem:[%s2485_s8 + $0x30] sm:$0xff] }
 0x10f   : > { %1939 = vmatprep.subr.bf16.mxu1 %v2088_v52 }
 0x111   : > { %1908 = vmatpush3.bf16.msra.mxu0 %v2088_v52 }
 0x112   : > { %1940 = vmatpush3.bf16.msra.mxu1 %v2088_v52  ;;  %2014 = vmatprep.subr.bf16.mxu0 %v2013_v55  ;;  %v1370_v52 = vld [vmem:[%s2485_s8 + $0x38] sm:$0xff] }
 0x113   : > { %2045 = vmatprep.subr.bf16.mxu1 %v2013_v55 }
 0x1c7   : > { %v1847_v57 = vpop.f32.mrb[16].mxu0 }
 0x1c8   : > { %v1879_v58 = vpop.f32.mrb[16].mxu1  ;;  %v843_v59 = vadd.f32 %v1847_v57, %v2323_v56  ;;  %v834_v62 = vpop.f32.mrb[17].mxu0 }
 0x1c9   : > { %v964_v60 = vadd.f32 %v1879_v58, %v2323_v56  ;;  %v955_v63 = vpop.f32.mrb[17].mxu1  ;;  %v835_v0 = vadd.f32 %v2323_v56, %v834_v62  ;;  %v1848_v2 = vpop.f32.mrb[18].mxu0 }
 0x1ca   : > { %v956_v1 = vadd.f32 %v2323_v56, %v955_v63  ;;  %v1880_v3 = vpop.f32.mrb[18].mxu1  ;;  %v846_v4 = vadd.f32 %v1848_v2, %v2323_v56  ;;  %v837_v6 = vpop.f32.mrb[19].mxu0  ;;  %v899_v10 = vmax.f32 %v843_v59, 0.0  ;;  %v1371_v2 = vld [vmem:[%s2485_s8 + $0x40] sm:$0xff] }
 0x1cb   : > { %v967_v5 = vadd.f32 %v1880_v3, %v2323_v56  ;;  %v958_v7 = vpop.f32.mrb[19].mxu1  ;;  %v838_v8 = vadd.f32 %v2323_v56, %v837_v6  ;;  %v1020_v11 = vmax.f32 %v964_v60, 0.0  ;;  %v897_v14 = vmax.f32 %v835_v0, 0.0  ;;  %v1372_v3 = vld [vmem:[%s2485_s8 + $0x48] sm:$0xff] }
 0x1cc   : > { %v959_v9 = vadd.f32 %v2323_v56, %v958_v7  ;;  %v900_v12 = vmax.f32 %v846_v4, 0.0  ;;  %v1018_v15 = vmax.f32 %v956_v1, 0.0  ;;  %v2025_v1 = vpack.c.bf16 %v1370_v52, %v1369_v61 }
 0x1cd   : > { %v1021_v13 = vmax.f32 %v967_v5, 0.0  ;;  %v898_v16 = vmax.f32 %v838_v8, 0.0 }
 0x1ce   : > { %v1019_v17 = vmax.f32 %v959_v9, 0.0  ;;  %v1052_v20 = vpack.c.bf16 %v900_v12, %v899_v10 }
 0x1cf   : > { %v1227_v21 = vpack.c.bf16 %v1021_v13, %v1020_v11  ;;  %v1051_v22 = vpack.c.bf16 %v898_v16, %v897_v14  ;;  %v1851_v24 = vpop.f32.mrb[20].mxu0  ;;  %v2029_v14 = vpack.c.bf16 %v1372_v3, %v1371_v2 }
 0x1d0   : > { %v1226_v23 = vpack.c.bf16 %v1019_v17, %v1018_v15  ;;  %v1883_v25 = vpop.f32.mrb[20].mxu1  ;;  %v859_v26 = vadd.f32 %v1851_v24, %v2323_v56  ;;  %v850_v28 = vpop.f32.mrb[21].mxu0  ;;  %v1374_v24 = vld [vmem:[%s2485_s8 + $0x58] sm:$0xff] }
 0x1d1   : > { %v980_v27 = vadd.f32 %v1883_v25, %v2323_v56  ;;  %v971_v29 = vpop.f32.mrb[21].mxu1  ;;  %v851_v33 = vadd.f32 %v2323_v56, %v850_v28  ;;  %v1852_v35 = vpop.f32.mrb[22].mxu0  ;;  %1909 = vmatprep.mubr.bf16.mxu0 %v1051_v22 }
 0x1d2   : > { %v972_v34 = vadd.f32 %v2323_v56, %v971_v29  ;;  %v1884_v36 = vpop.f32.mrb[22].mxu1  ;;  %1941 = vmatprep.mubr.bf16.mxu1 %v1226_v23  ;;  %v862_v37 = vadd.f32 %v1852_v35, %v2323_v56  ;;  %v853_v39 = vpop.f32.mrb[23].mxu0  ;;  %1910 = vmatmul.mubr.bf16.vlgmr.msra.gmra.mrb[32].mxu0 %v1052_v20  ;;  %v903_v44 = vmax.f32 %v859_v26, 0.0  ;;  %v1373_v23 = vld [vmem:[%s2485_s8 + $0x50] sm:$0xff] }
 0x1d3   : > { %v983_v38 = vadd.f32 %v1884_v36, %v2323_v56  ;;  %v974_v40 = vpop.f32.mrb[23].mxu1  ;;  %1942 = vmatmul.mubr.bf16.vlgmr.msra.gmra.mrb[32].mxu1 %v1227_v21  ;;  %v854_v41 = vadd.f32 %v2323_v56, %v853_v39  ;;  %2016 = vmatpush3.bf16.msra.mxu0 %v2013_v55  ;;  %v1024_v45 = vmax.f32 %v980_v27, 0.0  ;;  %v901_v48 = vmax.f32 %v851_v33, 0.0 }
 0x1d4   : > { %v975_v42 = vadd.f32 %v2323_v56, %v974_v40  ;;  %2053 = vmatpush3.bf16.msra.mxu1 %v2013_v55  ;;  %v904_v46 = vmax.f32 %v862_v37, 0.0  ;;  %2018 = vmatprep.subr.bf16.mxu0 %v2017_v30  ;;  %v1022_v49 = vmax.f32 %v972_v34, 0.0  ;;  %v2033_v35 = vpack.c.bf16 %v1374_v24, %v1373_v23 }
 0x1d5   : > { %v1025_v47 = vmax.f32 %v983_v38, 0.0  ;;  %2046 = vmatprep.subr.bf16.mxu1 %v2017_v30  ;;  %v902_v50 = vmax.f32 %v854_v41, 0.0 }
 0x1d6   : > { %v1023_v51 = vmax.f32 %v975_v42, 0.0  ;;  %v1054_v53 = vpack.c.bf16 %v904_v46, %v903_v44 }
 0x1d7   : > { %v1229_v54 = vpack.c.bf16 %v1025_v47, %v1024_v45  ;;  %v1053_v55 = vpack.c.bf16 %v902_v50, %v901_v48  ;;  %v1855_v58 = vpop.f32.mrb[24].mxu0  ;;  %2020 = vmatpush3.bf16.msra.mxu0 %v2017_v30 }
 0x1d8   : > { %v1228_v57 = vpack.c.bf16 %v1023_v51, %v1022_v49  ;;  %v1887_v59 = vpop.f32.mrb[24].mxu1  ;;  %2054 = vmatpush3.bf16.msra.mxu1 %v2017_v30  ;;  %v875_v60 = vadd.f32 %v1855_v58, %v2323_v56  ;;  %v866_v63 = vpop.f32.mrb[25].mxu0  ;;  %2022 = vmatprep.subr.bf16.mxu0 %v2021_v43  ;;  %v1376_v58 = vld [vmem:[%s2485_s8 + $0x68] sm:$0xff] }
 0x1d9   : > { %v996_v62 = vadd.f32 %v1887_v59, %v2323_v56  ;;  %v987_v0 = vpop.f32.mrb[25].mxu1  ;;  %2047 = vmatprep.subr.bf16.mxu1 %v2021_v43  ;;  %v867_v4 = vadd.f32 %v2323_v56, %v866_v63  ;;  %v1856_v6 = vpop.f32.mrb[26].mxu0  ;;  %1913 = vmatprep.mubr.bf16.mxu0 %v1053_v55 }
 0x1da   : > { %v988_v5 = vadd.f32 %v2323_v56, %v987_v0  ;;  %v1888_v7 = vpop.f32.mrb[26].mxu1  ;;  %1945 = vmatprep.mubr.bf16.mxu1 %v1228_v57  ;;  %v878_v8 = vadd.f32 %v1856_v6, %v2323_v56  ;;  %v869_v10 = vpop.f32.mrb[27].mxu0  ;;  %1914 = vmatmul.mubr.bf16.gmra.mrb[36].mxu0 %v1054_v53  ;;  %v907_v15 = vmax.f32 %v875_v60, 0.0  ;;  %v1377_v60 = vld [vmem:[%s2485_s8 + $0x70] sm:$0xff]  ;;  %v2402_v0 = vld [vmem:[%s2484_s7] ss:$0 sm:$0xff] }
 0x1db   : > { %v999_v9 = vadd.f32 %v1888_v7, %v2323_v56  ;;  %v990_v11 = vpop.f32.mrb[27].mxu1  ;;  %1946 = vmatmul.mubr.bf16.gmra.mrb[36].mxu1 %v1229_v54  ;;  %v870_v12 = vadd.f32 %v2323_v56, %v869_v10  ;;  %2024 = vmatpush3.bf16.msra.mxu0 %v2021_v43  ;;  %v1028_v16 = vmax.f32 %v996_v62, 0.0  ;;  %v905_v19 = vmax.f32 %v867_v4, 0.0  ;;  %v1378_v62 = vld [vmem:[%s2485_s8 + $0x78] sm:$0xff] }
 0x1dc   : > { %v991_v13 = vadd.f32 %v2323_v56, %v990_v11  ;;  %2055 = vmatpush3.bf16.msra.mxu1 %v2021_v43  ;;  %v908_v17 = vmax.f32 %v878_v8, 0.0  ;;  %2026 = vmatprep.subr.bf16.mxu0 %v2025_v1  ;;  %v1026_v20 = vmax.f32 %v988_v5, 0.0  ;;  %v2041_v63 = vpack.c.bf16 %v1378_v62, %v1377_v60 }
 0x1dd   : > { %v1029_v18 = vmax.f32 %v999_v9, 0.0  ;;  %2048 = vmatprep.subr.bf16.mxu1 %v2025_v1  ;;  %v906_v21 = vmax.f32 %v870_v12, 0.0 }
 0x1de   : > { %v1027_v22 = vmax.f32 %v991_v13, 0.0  ;;  %v1056_v25 = vpack.c.bf16 %v908_v17, %v907_v15 }
 0x1df   : > { %v1231_v26 = vpack.c.bf16 %v1029_v18, %v1028_v16  ;;  %v1055_v27 = vpack.c.bf16 %v906_v21, %v905_v19  ;;  %v1859_v29 = vpop.f32.mrb[28].mxu0  ;;  %2028 = vmatpush3.bf16.msra.mxu0 %v2025_v1 }
 0x1e0   : > { %v1230_v28 = vpack.c.bf16 %v1027_v22, %v1026_v20  ;;  %v1891_v30 = vpop.f32.mrb[28].mxu1  ;;  %2056 = vmatpush3.bf16.msra.mxu1 %v2025_v1  ;;  %v891_v31 = vadd.f32 %v1859_v29, %v2323_v56  ;;  %v882_v33 = vpop.f32.mrb[29].mxu0  ;;  %2030 = vmatprep.subr.bf16.mxu0 %v2029_v14 }
 0x1e1   : > { %v1012_v32 = vadd.f32 %v1891_v30, %v2323_v56  ;;  %v1003_v34 = vpop.f32.mrb[29].mxu1  ;;  %2049 = vmatprep.subr.bf16.mxu1 %v2029_v14  ;;  %v883_v36 = vadd.f32 %v2323_v56, %v882_v33  ;;  %v1860_v38 = vpop.f32.mrb[30].mxu0  ;;  %1917 = vmatprep.mubr.bf16.mxu0 %v1055_v27 }
 0x1e2   : > { %v1004_v37 = vadd.f32 %v2323_v56, %v1003_v34  ;;  %v1892_v39 = vpop.f32.mrb[30].mxu1  ;;  %1949 = vmatprep.mubr.bf16.mxu1 %v1230_v28  ;;  %v894_v40 = vadd.f32 %v1860_v38, %v2323_v56  ;;  %v885_v42 = vpop.f32.mrb[31].mxu0  ;;  %1918 = vmatmul.mubr.bf16.gmra.mrb[40].mxu0 %v1056_v25  ;;  %v911_v46 = vmax.f32 %v891_v31, 0.0 }
 0x1e3   : > { %v1015_v41 = vadd.f32 %v1892_v39, %v2323_v56  ;;  %v1006_v43 = vpop.f32.mrb[31].mxu1  ;;  %1950 = vmatmul.mubr.bf16.gmra.mrb[40].mxu1 %v1231_v26  ;;  %v886_v44 = vadd.f32 %v2323_v56, %v885_v42  ;;  %2032 = vmatpush3.bf16.msra.mxu0 %v2029_v14  ;;  %v1032_v47 = vmax.f32 %v1012_v32, 0.0  ;;  %v909_v50 = vmax.f32 %v883_v36, 0.0 }
 0x1e4   : > { %v1007_v45 = vadd.f32 %v2323_v56, %v1006_v43  ;;  %2057 = vmatpush3.bf16.msra.mxu1 %v2029_v14  ;;  %v912_v48 = vmax.f32 %v894_v40, 0.0  ;;  %2034 = vmatprep.subr.bf16.mxu0 %v2033_v35  ;;  %v1030_v51 = vmax.f32 %v1004_v37, 0.0  ;;  %v1375_v56 = vld [vmem:[%s2485_s8 + $0x60] sm:$0xff] }
 0x1e5   : > { %v1033_v49 = vmax.f32 %v1015_v41, 0.0  ;;  %2050 = vmatprep.subr.bf16.mxu1 %v2033_v35  ;;  %v910_v61 = vmax.f32 %v886_v44, 0.0  ;;  %v2037_v59 = vpack.c.bf16 %v1376_v58, %v1375_v56 }
 0x1e6   : > { %v1031_v52 = vmax.f32 %v1007_v45, 0.0  ;;  %v1058_v53 = vpack.c.bf16 %v912_v48, %v911_v46 }
 0x1e7   : > { %v1233_v54 = vpack.c.bf16 %v1033_v49, %v1032_v47  ;;  %v1057_v55 = vpack.c.bf16 %v910_v61, %v909_v50  ;;  %2036 = vmatpush3.bf16.msra.mxu0 %v2033_v35 }
 0x1e8   : > { %v1232_v57 = vpack.c.bf16 %v1031_v52, %v1030_v51  ;;  %2058 = vmatpush3.bf16.msra.mxu1 %v2033_v35  ;;  %2038 = vmatprep.subr.bf16.mxu0 %v2037_v59 }
 0x1e9   : > { %1921 = vmatprep.mubr.bf16.mxu0 %v1057_v55  ;;  %2051 = vmatprep.subr.bf16.mxu1 %v2037_v59 }
 0x1ea   : > { %1953 = vmatprep.mubr.bf16.mxu1 %v1232_v57  ;;  %1922 = vmatmul.mubr.bf16.gmra.mrb[44].mxu0 %v1058_v53 }
 0x1eb   : > { %1954 = vmatmul.mubr.bf16.gmra.mrb[44].mxu1 %v1233_v54  ;;  %2040 = vmatpush3.bf16.msra.mxu0 %v2037_v59 }
 0x1ec   : > { %2059 = vmatpush3.bf16.msra.mxu1 %v2037_v59  ;;  %2042 = vmatprep.subr.bf16.mxu0 %v2041_v63 }
 0x1ed   : > { %2052 = vmatprep.subr.bf16.mxu1 %v2041_v63 }
 0x1ef   : > { %2044 = vmatpush3.bf16.msra.mxu0 %v2041_v63 }
 0x1f0   : > { %2060 = vmatpush3.bf16.msra.mxu1 %v2041_v63 }
 0x2a5   : > { %v1911_v1 = vpop.f32.mrb[32].mxu0 }
 0x2a6   : > { %v1943_v2 = vpop.f32.mrb[32].mxu1  ;;  %v1156_v3 = vadd.f32 %v1911_v1, %v2402_v0  ;;  %v1147_v5 = vpop.f32.mrb[33].mxu0 }
 0x2a7   : > { %v1277_v4 = vadd.f32 %v1943_v2, %v2402_v0  ;;  %v1268_v6 = vpop.f32.mrb[33].mxu1  ;;  %v1148_v7 = vadd.f32 %v2402_v0, %v1147_v5  ;;  %v1912_v9 = vpop.f32.mrb[34].mxu0 }
 0x2a8   : > { %v1269_v8 = vadd.f32 %v2402_v0, %v1268_v6  ;;  %v1944_v10 = vpop.f32.mrb[34].mxu1  ;;  %v1212_v11 = vmax.f32 %v1156_v3, 0.0  ;;  %v1159_v13 = vadd.f32 %v1912_v9, %v2402_v0  ;;  %v1150_v15 = vpop.f32.mrb[35].mxu0 }
 0x2a9   : > { %v1333_v12 = vmax.f32 %v1277_v4, 0.0  ;;  %v1280_v14 = vadd.f32 %v1944_v10, %v2402_v0  ;;  %v1271_v16 = vpop.f32.mrb[35].mxu1  ;;  %v1210_v17 = vmax.f32 %v1148_v7, 0.0  ;;  %v1151_v19 = vadd.f32 %v2402_v0, %v1150_v15 }
 0x2aa   : > { %v1331_v18 = vmax.f32 %v1269_v8, 0.0  ;;  %v1272_v20 = vadd.f32 %v2402_v0, %v1271_v16  ;;  %v1213_v22 = vmax.f32 %v1159_v13, 0.0 }
 0x2ab   : > { %v1349_v21 = vmul.f32 %v1333_v12, %v1212_v11  ;;  %v1334_v23 = vmax.f32 %v1280_v14, 0.0  ;;  %v1211_v25 = vmax.f32 %v1151_v19, 0.0 }
 0x2ac   : > { %v1347_v24 = vmul.f32 %v1331_v18, %v1210_v17  ;;  %v1332_v26 = vmax.f32 %v1272_v20, 0.0 }
 0x2ad   : > { %v1350_v27 = vmul.f32 %v1334_v23, %v1213_v22  ;;  %v1915_v29 = vpop.f32.mrb[36].mxu0 }
 0x2ae   : > { %v1348_v28 = vmul.f32 %v1332_v26, %v1211_v25  ;;  %v1947_v30 = vpop.f32.mrb[36].mxu1  ;;  %1989 = vmatprep.mubr.f32.mxu0 %v1347_v24  ;;  %v1172_v31 = vadd.f32 %v1915_v29, %v2402_v0  ;;  %v1163_v33 = vpop.f32.mrb[37].mxu0 }
 0x2af   : > { %v1293_v32 = vadd.f32 %v1947_v30, %v2402_v0  ;;  %v1284_v34 = vpop.f32.mrb[37].mxu1  ;;  %v1164_v35 = vadd.f32 %v2402_v0, %v1163_v33  ;;  %v1916_v37 = vpop.f32.mrb[38].mxu0 }
 0x2b0   : > { %v1285_v36 = vadd.f32 %v2402_v0, %v1284_v34  ;;  %v1948_v38 = vpop.f32.mrb[38].mxu1  ;;  %1990 = vmatmul.mubr.f32.vlgmr.msra.gmra.mrb[48].mxu0 %v1348_v28  ;;  %v1216_v39 = vmax.f32 %v1172_v31, 0.0  ;;  %v1175_v41 = vadd.f32 %v1916_v37, %v2402_v0  ;;  %v1166_v43 = vpop.f32.mrb[39].mxu0 }
 0x2b1   : > { %v1337_v40 = vmax.f32 %v1293_v32, 0.0  ;;  %v1296_v42 = vadd.f32 %v1948_v38, %v2402_v0  ;;  %v1287_v44 = vpop.f32.mrb[39].mxu1  ;;  %1992 = vmatprep.mubr.f32.mxu0 %v1349_v21  ;;  %v1214_v45 = vmax.f32 %v1164_v35, 0.0  ;;  %v1167_v47 = vadd.f32 %v2402_v0, %v1166_v43 }
 0x2b2   : > { %v1335_v46 = vmax.f32 %v1285_v36, 0.0  ;;  %v1288_v48 = vadd.f32 %v2402_v0, %v1287_v44  ;;  %v1217_v50 = vmax.f32 %v1175_v41, 0.0 }
 0x2b3   : > { %v1353_v49 = vmul.f32 %v1337_v40, %v1216_v39  ;;  %v1338_v51 = vmax.f32 %v1296_v42, 0.0  ;;  %v1215_v52 = vmax.f32 %v1167_v47, 0.0 }
 0x2b4   : > { %v1351_v61 = vmul.f32 %v1335_v46, %v1214_v45  ;;  %v1336_v53 = vmax.f32 %v1288_v48, 0.0  ;;  %1993 = vmatmul.mubr.f32.gmra.mrb[50].mxu0 %v1350_v27 }
 0x2b5   : > { %v1354_v54 = vmul.f32 %v1338_v51, %v1217_v50  ;;  %v1919_v57 = vpop.f32.mrb[40].mxu0 }
 0x2b6   : > { %v1352_v55 = vmul.f32 %v1336_v53, %v1215_v52  ;;  %v1951_v56 = vpop.f32.mrb[40].mxu1  ;;  %1995 = vmatprep.mubr.f32.mxu0 %v1351_v61  ;;  %v1188_v58 = vadd.f32 %v1919_v57, %v2402_v0  ;;  %v1179_v60 = vpop.f32.mrb[41].mxu0 }
 0x2b7   : > { %v1309_v59 = vadd.f32 %v1951_v56, %v2402_v0  ;;  %v1300_v62 = vpop.f32.mrb[41].mxu1  ;;  %v1180_v63 = vadd.f32 %v2402_v0, %v1179_v60  ;;  %v1920_v2 = vpop.f32.mrb[42].mxu0 }
 0x2b8   : > { %v1301_v1 = vadd.f32 %v2402_v0, %v1300_v62  ;;  %v1952_v3 = vpop.f32.mrb[42].mxu1  ;;  %1996 = vmatmul.mubr.f32.gmra.mrb[52].mxu0 %v1352_v55  ;;  %v1220_v4 = vmax.f32 %v1188_v58, 0.0  ;;  %v1191_v6 = vadd.f32 %v1920_v2, %v2402_v0  ;;  %v1182_v8 = vpop.f32.mrb[43].mxu0 }
 0x2b9   : > { %v1341_v5 = vmax.f32 %v1309_v59, 0.0  ;;  %v1312_v7 = vadd.f32 %v1952_v3, %v2402_v0  ;;  %v1303_v9 = vpop.f32.mrb[43].mxu1  ;;  %1998 = vmatprep.mubr.f32.mxu0 %v1353_v49  ;;  %v1218_v10 = vmax.f32 %v1180_v63, 0.0  ;;  %v1183_v12 = vadd.f32 %v2402_v0, %v1182_v8 }
 0x2ba   : > { %v1339_v11 = vmax.f32 %v1301_v1, 0.0  ;;  %v1304_v13 = vadd.f32 %v2402_v0, %v1303_v9  ;;  %v1221_v15 = vmax.f32 %v1191_v6, 0.0 }
 0x2bb   : > { %v1357_v14 = vmul.f32 %v1341_v5, %v1220_v4  ;;  %v1342_v16 = vmax.f32 %v1312_v7, 0.0  ;;  %v1219_v18 = vmax.f32 %v1183_v12, 0.0 }
 0x2bc   : > { %v1355_v17 = vmul.f32 %v1339_v11, %v1218_v10  ;;  %v1340_v19 = vmax.f32 %v1304_v13, 0.0  ;;  %1999 = vmatmul.mubr.f32.gmra.mrb[54].mxu0 %v1354_v54 }
 0x2bd   : > { %v1358_v20 = vmul.f32 %v1342_v16, %v1221_v15  ;;  %v1923_v22 = vpop.f32.mrb[44].mxu0 }
 0x2be   : > { %v1356_v21 = vmul.f32 %v1340_v19, %v1219_v18  ;;  %v1955_v23 = vpop.f32.mrb[44].mxu1  ;;  %2001 = vmatprep.mubr.f32.mxu1 %v1355_v17  ;;  %v1204_v24 = vadd.f32 %v1923_v22, %v2402_v0  ;;  %v1195_v26 = vpop.f32.mrb[45].mxu0 }
 0x2bf   : > { %v1325_v25 = vadd.f32 %v1955_v23, %v2402_v0  ;;  %v1316_v27 = vpop.f32.mrb[45].mxu1  ;;  %v1196_v28 = vadd.f32 %v2402_v0, %v1195_v26  ;;  %v1924_v30 = vpop.f32.mrb[46].mxu0 }
 0x2c0   : > { %v1317_v29 = vadd.f32 %v2402_v0, %v1316_v27  ;;  %v1956_v31 = vpop.f32.mrb[46].mxu1  ;;  %2002 = vmatmul.mubr.f32.vlgmr.msra.gmra.mrb[48].mxu1 %v1356_v21  ;;  %v1224_v32 = vmax.f32 %v1204_v24, 0.0  ;;  %v1207_v34 = vadd.f32 %v1924_v30, %v2402_v0  ;;  %v1198_v36 = vpop.f32.mrb[47].mxu0 }
 0x2c1   : > { %v1345_v33 = vmax.f32 %v1325_v25, 0.0  ;;  %v1328_v35 = vadd.f32 %v1956_v31, %v2402_v0  ;;  %v1319_v37 = vpop.f32.mrb[47].mxu1  ;;  %2004 = vmatprep.mubr.f32.mxu1 %v1357_v14  ;;  %v1222_v38 = vmax.f32 %v1196_v28, 0.0  ;;  %v1199_v40 = vadd.f32 %v2402_v0, %v1198_v36 }
 0x2c2   : > { %v1343_v39 = vmax.f32 %v1317_v29, 0.0  ;;  %v1320_v41 = vadd.f32 %v2402_v0, %v1319_v37  ;;  %v1225_v43 = vmax.f32 %v1207_v34, 0.0 }
 0x2c3   : > { %v1361_v42 = vmul.f32 %v1345_v33, %v1224_v32  ;;  %v1346_v44 = vmax.f32 %v1328_v35, 0.0  ;;  %v1223_v46 = vmax.f32 %v1199_v40, 0.0 }
 0x2c4   : > { %v1359_v45 = vmul.f32 %v1343_v39, %v1222_v38  ;;  %v1344_v47 = vmax.f32 %v1320_v41, 0.0  ;;  %2005 = vmatmul.mubr.f32.gmra.mrb[50].mxu1 %v1358_v20 }
 0x2c5   : > { %v1362_v48 = vmul.f32 %v1346_v44, %v1225_v43 }
 0x2c6   : > { %v1360_v49 = vmul.f32 %v1344_v47, %v1223_v46  ;;  %2007 = vmatprep.mubr.f32.mxu1 %v1359_v45 }
 0x2c8   : > { %2008 = vmatmul.mubr.f32.gmra.mrb[52].mxu1 %v1360_v49 }
 0x2c9   : > { %2010 = vmatprep.mubr.f32.mxu1 %v1361_v42 }
 0x2cc   : > { %2011 = vmatmul.mubr.f32.gmra.mrb[54].mxu1 %v1362_v48 }
 0x383   : > { %v1991_v0 = vpop.f32.mrb[48].mxu0 }
 0x384   : > { %1526 = vst.msk [vmem:[%s2440_s23 + $0x8] sm:$0xff] %vm1524_vm1, %v1991_v0  ;;  %v1445_v50 = vpop.f32.mrb[49].mxu0 }
 0x385   : > { %1525 = vst.msk [vmem:[%s2440_s23] sm:$0xff] %vm1524_vm1, %v1445_v50 }
 0x387   : > { %v1994_v51 = vpop.f32.mrb[50].mxu0 }
 0x388   : > { %1528 = vst.msk [vmem:[%s2440_s23 + $0x18] sm:$0xff] %vm1524_vm1, %v1994_v51  ;;  %v1455_v61 = vpop.f32.mrb[51].mxu0 }
 0x389   : > { %1527 = vst.msk [vmem:[%s2440_s23 + $0x10] sm:$0xff] %vm1524_vm1, %v1455_v61 }
 0x38b   : > { %v1997_v52 = vpop.f32.mrb[52].mxu0 }
 0x38c   : > { %1530 = vst.msk [vmem:[%s2440_s23 + $0x28] sm:$0xff] %vm1524_vm1, %v1997_v52  ;;  %v1465_v53 = vpop.f32.mrb[53].mxu0 }
 0x38d   : > { %1529 = vst.msk [vmem:[%s2440_s23 + $0x20] sm:$0xff] %vm1524_vm1, %v1465_v53 }
 0x38f   : > { %v2000_v54 = vpop.f32.mrb[54].mxu0 }
 0x390   : > { %1532 = vst.msk [vmem:[%s2440_s23 + $0x38] sm:$0xff] %vm1524_vm1, %v2000_v54  ;;  %v1475_v55 = vpop.f32.mrb[55].mxu0 }
 0x391   : > { %1531 = vst.msk [vmem:[%s2440_s23 + $0x30] sm:$0xff] %vm1524_vm1, %v1475_v55 }
 0x393   : > { %v2003_v57 = vpop.f32.mrb[48].mxu1 }
 0x394   : > { %1534 = vst.msk [vmem:[%s2440_s23 + $0x48] sm:$0xff] %vm1524_vm1, %v2003_v57  ;;  %v1485_v56 = vpop.f32.mrb[49].mxu1 }
 0x395   : > { %1533 = vst.msk [vmem:[%s2440_s23 + $0x40] sm:$0xff] %vm1524_vm1, %v1485_v56 }
 0x397   : > { %v2006_v58 = vpop.f32.mrb[50].mxu1 }
 0x398   : > { %1536 = vst.msk [vmem:[%s2440_s23 + $0x58] sm:$0xff] %vm1524_vm1, %v2006_v58  ;;  %v1495_v59 = vpop.f32.mrb[51].mxu1 }
 0x399   : > { %1535 = vst.msk [vmem:[%s2440_s23 + $0x50] sm:$0xff] %vm1524_vm1, %v1495_v59 }
 0x39b   : > { %v2009_v60 = vpop.f32.mrb[52].mxu1 }
 0x39c   : > { %1538 = vst.msk [vmem:[%s2440_s23 + $0x68] sm:$0xff] %vm1524_vm1, %v2009_v60  ;;  %v1505_v62 = vpop.f32.mrb[53].mxu1 }
 0x39d   : > { %1537 = vst.msk [vmem:[%s2440_s23 + $0x60] sm:$0xff] %vm1524_vm1, %v1505_v62 }
 0x39f   : > { %v2012_v63 = vpop.f32.mrb[54].mxu1 }
 0x3a0   : > { %1540 = vst.msk [vmem:[%s2440_s23 + $0x78] sm:$0xff] %vm1524_vm1, %v2012_v63  ;;  %v1515_v1 = vpop.f32.mrb[55].mxu1 }
 0x3a1   : > { %1539 = vst.msk [vmem:[%s2440_s23 + $0x70] sm:$0xff] %vm1524_vm1, %v1515_v1 }
 0x3a2 PF: > { %s19_s30 = sadd.s32 1, %s2095_s30  }
 0x3a3   : > { %p16_p4 = scmp.ge.s32.totalorder %s19_s30, 4  }
 0x3a5   :  { %18 = sbr.rel (!%p16_p4) target bundleno = 1 (0x1), region = 89 }

</bundles_post_ra>
